<compile_context>
chip_gen: v7x
topology: tpu7x:2x2x1
jax: 0.10.0
libtpu: 0.0.40
codegen_flags: <defaults>
</compile_context>

<pallas_src>
import functools

import jax
import jax.numpy as jnp
from jax.experimental import pallas as pl
from jax.experimental.pallas import tpu as pltpu


_INV_SQRT2 = 0.7071067811865476  # 1/sqrt(2), hoisted compile-time constant

# Conservative defaults sized for v7x (64 MiB VMEM per TensorCore).
_DEFAULT_VMEM_LIMIT = 48 * 1024 * 1024
_DEFAULT_BLOCK_BUDGET = 24 * 1024 * 1024


def _round_up(x, m):
    return (x + m - 1) // m * m


def _mlp_rows(x2d, g, w1x_ref, w1g_ref, b1_ref, w2_ref, b2_ref, tb, tn, out_dtype):
    """Concat-free fc1 -> exact GELU -> fc2 on tb*tn flattened rows.

    x2d: (tb*tn, C) bf16 point features; g: (tb, C) bf16 per-sample max.
    Returns (tb, tn, O) in out_dtype.
    """
    hp = w1x_ref.shape[1]
    op = w2_ref.shape[1]

    # fc1 without ever materializing the (rows, 2C) concat:
    #   h = x @ W1_x + (g @ W1_g + b1), g-term broadcast over the tn rows.
    hx = jnp.dot(x2d, w1x_ref[...], preferred_element_type=jnp.float32)   # (tb*tn, Hp)
    hg = jnp.dot(g, w1g_ref[...], preferred_element_type=jnp.float32)     # (tb, Hp)
    hg = hg + b1_ref[...]                                                  # fold bias once

    if tb == 1:
        h = hx + hg                      # stay flat: no reshape round-trip
    else:
        # tn % 8 == 0 keeps these reshapes layout-preserving (no VMEM copy).
        h = hx.reshape(tb, tn, hp) + hg.reshape(tb, 1, hp)

    # Exact (erf) GELU in f32, matching torch.nn.GELU default.
    # TODO(synk): switch to tanh GELU (EUP slot) if profiling shows VALU binding.
    h = 0.5 * h * (1.0 + jax.lax.erf(h * _INV_SQRT2))

    y = jnp.dot(h.reshape(tb * tn, hp).astype(w2_ref.dtype), w2_ref[...],
                preferred_element_type=jnp.float32)                        # (tb*tn, O)
    y = y + b2_ref[...]
    return y.reshape(tb, tn, op).astype(out_dtype)


def _rebuild_kernel_fused(x_ref, w1x_ref, w1g_ref, b1_ref, w2_ref, b2_ref, o_ref):
    """One grid step = TB whole samples; per-sample max computed in-kernel."""
    tb, n, c = x_ref.shape
    x = x_ref[...]                                      # (TB, N, C), native dtype
    g = jnp.max(x, axis=1)                              # (TB, C), full-precision max
    xc = x.astype(w1x_ref.dtype).reshape(tb * n, c)     # bf16 for the MXU
    o_ref[...] = _mlp_rows(xc, g.astype(w1x_ref.dtype),
                           w1x_ref, w1g_ref, b1_ref, w2_ref, b2_ref,
                           tb, n, o_ref.dtype)


def _rebuild_kernel_tiled(g_ref, x_ref, w1x_ref, w1g_ref, b1_ref, w2_ref, b2_ref, o_ref):
    """One grid step = one sample x one N-tile; g precomputed in the wrapper."""
    tb, tn, c = x_ref.shape                             # tb == 1
    xc = x_ref[...].astype(w1x_ref.dtype).reshape(tb * tn, c)
    g = g_ref[...].reshape(tb, c).astype(w1x_ref.dtype)
    o_ref[...] = _mlp_rows(xc, g, w1x_ref, w1g_ref, b1_ref, w2_ref, b2_ref,
                           tb, tn, o_ref.dtype)


def _pick_block_batch(B, N, row_bytes, budget_bytes):
    """Largest TB | B whose block fits the budget; prefer >= 2 grid steps
    (v7x has 2 TensorCores, and pipelining wants >= 2 steps)."""
    divisors = [d for d in range(1, B + 1) if B % d == 0]
    feasible = [d for d in divisors if d * N * row_bytes <= budget_bytes] or [1]
    multi_step = [d for d in feasible if B // d >= 2]
    return max(multi_step) if multi_step else max(feasible)


def _pick_block_n(N, row_bytes, budget_bytes):
    """Largest N-tile that fits the budget and keeps the (8,128) block rule
    (TN % 8 == 0 or TN == N).  Prefers a divisor of N (no ragged last block)."""
    divs = [d for d in range(1, N + 1)
            if N % d == 0 and (d % 8 == 0 or d == N) and d * row_bytes <= budget_bytes]
    if divs:
        return max(divs)
    tn = (budget_bytes // row_bytes) // 8 * 8
    return int(min(N, max(8, tn)))


def simple_rebuild_fc_layer(rec_feature, w1, b1, w2, b2, *, step, freedom,
                            block_budget_bytes=_DEFAULT_BLOCK_BUDGET,
                            vmem_limit_bytes=_DEFAULT_VMEM_LIMIT):
    """rec_feature: (B, N, C).  w1: (2C, H), b1: (H,), w2: (H, step*freedom),
    b2: (step*freedom,).  Returns (B, N, step, freedom)."""
    B, N, C = rec_feature.shape
    H = w1.shape[1]
    O = step * freedom
    assert w1.shape == (2 * C, H)
    assert w2.shape == (H, O)
    assert b1.shape == (H,) and b2.shape == (O,)

    # Hidden width padded to a lane multiple so fc1's output / fc2's contraction
    # are lane-dense.  Exact: padded hidden lanes are GELU(0)=0 and meet zero
    # rows of w2.  The OUTPUT is NOT padded: for tiny O a masked vst is far
    # cheaper than a 10x padded HBM writeback plus a slice pass.
    Hp = _round_up(H, 128)

    compute_dtype = jnp.bfloat16  # MXU-native on v5e / v6e / v7x
    w1_g = jnp.pad(w1[:C], ((0, 0), (0, Hp - H))).astype(compute_dtype)
    w1_x = jnp.pad(w1[C:], ((0, 0), (0, Hp - H))).astype(compute_dtype)
    b1_p = jnp.pad(b1.reshape(1, H), ((0, 0), (0, Hp - H))).astype(jnp.float32)
    w2_p = jnp.pad(w2, ((0, Hp - H), (0, 0))).astype(compute_dtype)
    b2_p = b2.reshape(1, O).astype(jnp.float32)

    in_bytes = rec_feature.dtype.itemsize
    out_bytes = rec_feature.dtype.itemsize
    # Per-row VMEM: double-buffered x / out tiles + the NON-double-buffered
    # intermediates (bf16 x copy, hx & h in f32, bf16 h copy, y in f32).
    row_bytes = (2 * C * in_bytes          # x tile (double-buffered)
                 + 2 * O * out_bytes       # out tile (double-buffered)
                 + C * 2                   # x cast to bf16
                 + 2 * Hp * 4              # hx + h (f32)
                 + Hp * 2                  # h cast to bf16 for fc2
                 + O * 4)                  # y (f32)

    weight_specs = [
        # Constant index_maps -> weights/biases are DMA'd only once.  They are
        # tiny here; at production widths, single-buffering them
        # (pipeline_mode=pl.Buffered(1)) would reclaim the duplicate VMEM for a
        # larger activation tile.
        pl.BlockSpec((C, Hp), lambda *_: (0, 0)),
        pl.BlockSpec((C, Hp), lambda *_: (0, 0)),
        pl.BlockSpec((1, Hp), lambda *_: (0, 0)),
        pl.BlockSpec((Hp, O), lambda *_: (0, 0)),
        pl.BlockSpec((1, O), lambda *_: (0, 0)),
    ]

    if N * row_bytes <= block_budget_bytes:
        # Whole-N path: per-sample max computed in-kernel (single read of x).
        TB = _pick_block_batch(B, N, row_bytes, block_budget_bytes)
        out = pl.pallas_call(
            _rebuild_kernel_fused,
            out_shape=jax.ShapeDtypeStruct((B, N, O), rec_feature.dtype),
            grid_spec=pltpu.PrefetchScalarGridSpec(
                num_scalar_prefetch=0,
                grid=(B // TB,),
                in_specs=[pl.BlockSpec((TB, N, C), lambda b: (b, 0, 0))] + weight_specs,
                out_specs=pl.BlockSpec((TB, N, O), lambda b: (b, 0, 0)),
            ),
            compiler_params=pltpu.CompilerParams(
                dimension_semantics=("parallel",),
                vmem_limit_bytes=vmem_limit_bytes,
            ),
        )(rec_feature, w1_x, w1_g, b1_p, w2_p, b2_p)
    else:
        # Large-N path: hoist the per-sample max to a cheap XLA reduce so VMEM
        # no longer scales with N, then tile both B and N.
        g = jnp.max(rec_feature, axis=1, keepdims=True)        # (B, 1, C)
        TN = _pick_block_n(N, row_bytes, block_budget_bytes)
        out = pl.pallas_call(
            _rebuild_kernel_tiled,
            out_shape=jax.ShapeDtypeStruct((B, N, O), rec_feature.dtype),
            grid_spec=pltpu.PrefetchScalarGridSpec(
                num_scalar_prefetch=0,
                grid=(B, pl.cdiv(N, TN)),
                in_specs=[pl.BlockSpec((1, 1, C), lambda b, n: (b, 0, 0)),
                          pl.BlockSpec((1, TN, C), lambda b, n: (b, n, 0))] + weight_specs,
                out_specs=pl.BlockSpec((1, TN, O), lambda b, n: (b, n, 0)),
            ),
            compiler_params=pltpu.CompilerParams(
                dimension_semantics=("parallel", "parallel"),
                vmem_limit_bytes=vmem_limit_bytes,
            ),
        )(g, rec_feature, w1_x, w1_g, b1_p, w2_p, b2_p)

    # Pure metadata reshape; no slice pass (the kernel stores only O lanes).
    return out.reshape(B, N, step, freedom)


def _reference(rec_feature, w1, b1, w2, b2, *, step, freedom):
    """Pure-JAX f32 reference of the PyTorch forward."""
    B, N, C = rec_feature.shape
    g = jnp.max(rec_feature, axis=1)
    patch = jnp.concatenate(
        [jnp.broadcast_to(g[:, None, :], rec_feature.shape), rec_feature], axis=-1)
    h = patch @ w1 + b1
    h = 0.5 * h * (1.0 + jax.lax.erf(h / jnp.sqrt(2.0)))
    y = h @ w2 + b2
    return y.reshape(B, N, step, freedom)


def _make_params(key, C, H, O):
    k_w1, k_b1, k_w2, k_b2 = jax.random.split(key, 4)
    in_dims = 2 * C
    lim1 = 1.0 / jnp.sqrt(jnp.float32(in_dims))
    lim2 = 1.0 / jnp.sqrt(jnp.float32(H))
    w1 = jax.random.uniform(k_w1, (in_dims, H), jnp.float32, -lim1, lim1)
    b1 = jax.random.uniform(k_b1, (H,), jnp.float32, -lim1, lim1)
    w2 = jax.random.uniform(k_w2, (H, O), jnp.float32, -lim2, lim2)
    b2 = jax.random.uniform(k_b2, (O,), jnp.float32, -lim2, lim2)
    return w1, b1, w2, b2


if __name__ == "__main__":
    step, freedom = 4, 3
    hidden_dim = 32
    O = step * freedom

    key = jax.random.PRNGKey(0)
    k0, k1, k2, k3 = jax.random.split(key, 4)

    # --- Test 1: whole-N path (in-kernel max), TB=2 batched blocks, 2 grid steps ---
    B, N, C = 4, 8, 32
    w1, b1, w2, b2 = _make_params(k0, C, hidden_dim, O)
    x = jax.random.normal(k1, (B, N, C), dtype=jnp.float32)

    run = jax.jit(functools.partial(simple_rebuild_fc_layer, step=step, freedom=freedom))
    out = jax.block_until_ready(run(x, w1, b1, w2, b2))
    ref = _reference(x, w1, b1, w2, b2, step=step, freedom=freedom)
    assert out.shape == (B, N, step, freedom), out.shape
    err = float(jnp.max(jnp.abs(out - ref)))
    # bf16 MXU operands (f32 accumulation) vs the f32 reference -> loose tolerance.
    assert err < 3e-2, f"fused-path max abs err {err}"

    # --- Test 2: large-N path (hoisted max + N tiling), forced via a tiny budget ---
    B2, N2 = 2, 64
    w1b, b1b, w2b, b2b = _make_params(k2, C, hidden_dim, O)
    x2 = jax.random.normal(k3, (B2, N2, C), dtype=jnp.float32)
    run_tiled = jax.jit(functools.partial(simple_rebuild_fc_layer, step=step,
                                          freedom=freedom,
                                          block_budget_bytes=64 * 1024))
    out2 = jax.block_until_ready(run_tiled(x2, w1b, b1b, w2b, b2b))
    ref2 = _reference(x2, w1b, b1b, w2b, b2b, step=step, freedom=freedom)
    assert out2.shape == (B2, N2, step, freedom), out2.shape
    err2 = float(jnp.max(jnp.abs(out2 - ref2)))
    assert err2 < 3e-2, f"tiled-path max abs err {err2}"

    print("KERNEL_OK")
</pallas_src>

<mosaic_0001>
module attributes {stable_mosaic.version = 11 : i64} {
  func.func @_rebuild_kernel_fused(%arg0: i32, %arg1: memref<2x8x32xf32, #tpu.memory_space<vmem>>, %arg2: memref<32x128xbf16, #tpu.memory_space<vmem>>, %arg3: memref<32x128xbf16, #tpu.memory_space<vmem>>, %arg4: memref<1x128xf32, #tpu.memory_space<vmem>>, %arg5: memref<128x12xbf16, #tpu.memory_space<vmem>>, %arg6: memref<1x12xf32, #tpu.memory_space<vmem>>, %arg7: memref<2x8x12xf32, #tpu.memory_space<vmem>>) attributes {dimension_semantics = [#tpu.dimension_semantics<parallel>], iteration_bounds = array<i64: 2>, scalar_prefetch = 0 : i64, scratch_operands = 0 : i64, tpu.core_type = #tpu.core_type<tc>, window_params = [{transform_indices = @transform_0, window_bounds = array<i64: 2, 8, 32>}, {pipeline_mode = #tpu.pipeline_mode<synchronous>, transform_indices = @transform_1, window_bounds = array<i64: 32, 128>}, {pipeline_mode = #tpu.pipeline_mode<synchronous>, transform_indices = @transform_2, window_bounds = array<i64: 32, 128>}, {pipeline_mode = #tpu.pipeline_mode<synchronous>, transform_indices = @transform_3, window_bounds = array<i64: 1, 128>}, {pipeline_mode = #tpu.pipeline_mode<synchronous>, transform_indices = @transform_4, window_bounds = array<i64: 128, 12>}, {pipeline_mode = #tpu.pipeline_mode<synchronous>, transform_indices = @transform_5, window_bounds = array<i64: 1, 12>}, {transform_indices = @transform_6, window_bounds = array<i64: 2, 8, 12>}]} {
    %c0 = arith.constant 0 : index
    %c0_0 = arith.constant 0 : index
    %c0_1 = arith.constant 0 : index
    %0 = vector.load %arg1[%c0, %c0_0, %c0_1] : memref<2x8x32xf32, #tpu.memory_space<vmem>>, vector<2x8x32xf32>
    %cst = arith.constant dense<0xFF800000> : vector<2x32xf32>
    %1 = vector.multi_reduction <maximumf>, %0, %cst [1] : vector<2x8x32xf32> to vector<2x32xf32>
    %2 = arith.truncf %0 : vector<2x8x32xf32> to vector<2x8x32xbf16>
    %3 = vector.shape_cast %2 : vector<2x8x32xbf16> to vector<16x32xbf16>
    %4 = arith.truncf %1 : vector<2x32xf32> to vector<2x32xbf16>
    %c0_2 = arith.constant 0 : index
    %c0_3 = arith.constant 0 : index
    %5 = vector.load %arg2[%c0_2, %c0_3] : memref<32x128xbf16, #tpu.memory_space<vmem>>, vector<32x128xbf16>
    %cst_4 = arith.constant dense<0.000000e+00> : vector<16x128xf32>
    %6 = tpu.matmul %3, %5, %cst_4 {dimension_numbers = #tpu.dot_dimension_numbers<[1], [0], [0], [1], [0, 0, 1, 1], [], []>} : vector<16x32xbf16>, vector<32x128xbf16>, vector<16x128xf32> -> vector<16x128xf32>
    %c0_5 = arith.constant 0 : index
    %c0_6 = arith.constant 0 : index
    %7 = vector.load %arg3[%c0_5, %c0_6] : memref<32x128xbf16, #tpu.memory_space<vmem>>, vector<32x128xbf16>
    %cst_7 = arith.constant dense<0.000000e+00> : vector<2x128xf32>
    %8 = tpu.matmul %4, %7, %cst_7 {dimension_numbers = #tpu.dot_dimension_numbers<[1], [0], [0], [1], [0, 0, 1, 1], [], []>} : vector<2x32xbf16>, vector<32x128xbf16>, vector<2x128xf32> -> vector<2x128xf32>
    %c0_8 = arith.constant 0 : index
    %c0_9 = arith.constant 0 : index
    %9 = vector.load %arg4[%c0_8, %c0_9] : memref<1x128xf32, #tpu.memory_space<vmem>>, vector<1x128xf32>
    %10 = vector.broadcast %9 : vector<1x128xf32> to vector<2x128xf32>
    %11 = arith.addf %8, %10 : vector<2x128xf32>
    %12 = vector.shape_cast %6 : vector<16x128xf32> to vector<2x8x128xf32>
    %13 = vector.shape_cast %11 : vector<2x128xf32> to vector<2x1x128xf32>
    %14 = vector.broadcast %13 : vector<2x1x128xf32> to vector<2x8x128xf32>
    %15 = arith.addf %12, %14 : vector<2x8x128xf32>
    %cst_10 = arith.constant 5.000000e-01 : f32
    %16 = vector.broadcast %cst_10 : f32 to vector<2x8x128xf32>
    %17 = arith.mulf %16, %15 : vector<2x8x128xf32>
    %cst_11 = arith.constant 0.707106769 : f32
    %18 = vector.broadcast %cst_11 : f32 to vector<2x8x128xf32>
    %19 = arith.mulf %15, %18 : vector<2x8x128xf32>
    %20 = math.erf %19 : vector<2x8x128xf32>
    %cst_12 = arith.constant 1.000000e+00 : f32
    %21 = vector.broadcast %cst_12 : f32 to vector<2x8x128xf32>
    %22 = arith.addf %21, %20 : vector<2x8x128xf32>
    %23 = arith.mulf %17, %22 : vector<2x8x128xf32>
    %24 = vector.shape_cast %23 : vector<2x8x128xf32> to vector<16x128xf32>
    %25 = arith.truncf %24 : vector<16x128xf32> to vector<16x128xbf16>
    %c0_13 = arith.constant 0 : index
    %c0_14 = arith.constant 0 : index
    %26 = vector.load %arg5[%c0_13, %c0_14] : memref<128x12xbf16, #tpu.memory_space<vmem>>, vector<128x12xbf16>
    %cst_15 = arith.constant dense<0.000000e+00> : vector<16x12xf32>
    %27 = tpu.matmul %25, %26, %cst_15 {dimension_numbers = #tpu.dot_dimension_numbers<[1], [0], [0], [1], [0, 0, 1, 1], [], []>} : vector<16x128xbf16>, vector<128x12xbf16>, vector<16x12xf32> -> vector<16x12xf32>
    %c0_16 = arith.constant 0 : index
    %c0_17 = arith.constant 0 : index
    %28 = vector.load %arg6[%c0_16, %c0_17] : memref<1x12xf32, #tpu.memory_space<vmem>>, vector<1x12xf32>
    %29 = vector.broadcast %28 : vector<1x12xf32> to vector<16x12xf32>
    %30 = arith.addf %27, %29 : vector<16x12xf32>
    %31 = vector.shape_cast %30 : vector<16x12xf32> to vector<2x8x12xf32>
    %c0_18 = arith.constant 0 : index
    %c0_19 = arith.constant 0 : index
    %c0_20 = arith.constant 0 : index
    %32 = vector.load %arg7[%c0_18, %c0_19, %c0_20] : memref<2x8x12xf32, #tpu.memory_space<vmem>>, vector<2x8x12xf32>
    tpu.vector_store %arg7[%c0_18, %c0_19, %c0_20], %31 {strides = array<i32>} : memref<2x8x12xf32, #tpu.memory_space<vmem>>, vector<2x8x12xf32>,
    return
  }
  func.func @transform_0(%arg0: i32) -> (i32, i32, i32) {
    %c0_i32 = arith.constant 0 : i32
    %c0_i32_0 = arith.constant 0 : i32
    %c0_i32_1 = arith.constant 0 : i32
    return %arg0, %c0_i32, %c0_i32_0 : i32, i32, i32
  }
  func.func @transform_1(%arg0: i32) -> (i32, i32) {
    %c0_i32 = arith.constant 0 : i32
    %c0_i32_0 = arith.constant 0 : i32
    %c0_i32_1 = arith.constant 0 : i32
    return %c0_i32, %c0_i32_0 : i32, i32
  }
  func.func @transform_2(%arg0: i32) -> (i32, i32) {
    %c0_i32 = arith.constant 0 : i32
    %c0_i32_0 = arith.constant 0 : i32
    %c0_i32_1 = arith.constant 0 : i32
    return %c0_i32, %c0_i32_0 : i32, i32
  }
  func.func @transform_3(%arg0: i32) -> (i32, i32) {
    %c0_i32 = arith.constant 0 : i32
    %c0_i32_0 = arith.constant 0 : i32
    %c0_i32_1 = arith.constant 0 : i32
    return %c0_i32, %c0_i32_0 : i32, i32
  }
  func.func @transform_4(%arg0: i32) -> (i32, i32) {
    %c0_i32 = arith.constant 0 : i32
    %c0_i32_0 = arith.constant 0 : i32
    %c0_i32_1 = arith.constant 0 : i32
    return %c0_i32, %c0_i32_0 : i32, i32
  }
  func.func @transform_5(%arg0: i32) -> (i32, i32) {
    %c0_i32 = arith.constant 0 : i32
    %c0_i32_0 = arith.constant 0 : i32
    %c0_i32_1 = arith.constant 0 : i32
    return %c0_i32, %c0_i32_0 : i32, i32
  }
  func.func @transform_6(%arg0: i32) -> (i32, i32, i32) {
    %c0_i32 = arith.constant 0 : i32
    %c0_i32_0 = arith.constant 0 : i32
    %c0_i32_1 = arith.constant 0 : i32
    return %arg0, %c0_i32, %c0_i32_0 : i32, i32, i32
  }
}

</mosaic_0001>

<bundles_post_ra>
// kernel: simple_rebuild_fc_layer.1
= control target key start
LH: loop header
LB: loop body
LE: loop exit
PB: predicated region body
PF: predicated region fallthrough
CT: control target
= control target key end

     0   :  { %s785_s21 = smov 0   ;;  %s873_s0 = inlined_call_operand.vmem [shape: f32[4,8,32], index: 0, kind: input, shape index: {}]   ;;  %s874_s1 = inlined_call_operand.vmem [shape: bf16[32,128], index: 1, kind: input, shape index: {}]   ;;  %s875_s2 = inlined_call_operand.vmem [shape: bf16[32,128], index: 2, kind: input, shape index: {}]   ;;  %s876_s3 = inlined_call_operand.vmem [shape: f32[1,128], index: 3, kind: input, shape index: {}]   ;;  %s877_s4 = inlined_call_operand.vmem [shape: bf16[128,12], index: 4, kind: input, shape index: {}]   ;;  %s878_s5 = inlined_call_operand.vmem [shape: f32[1,12], index: 5, kind: input, shape index: {}]   ;;  %s879_s6 = inlined_call_operand.vmem [shape: f32[4,8,12], index: 6, kind: output, shape index: {}]  }
   0x1 LB: > { %s632_s22 = sadd.s32 4294967295, %s745_s21   ;;  %p636_p0 = scmp.ge.s32.totalorder %s745_s21, 1  ;;  %s745_s21 = sphi %s785_s21, %s16_s21  }
   0x2   : > { %p213_p1 = scmp.lt.s32.totalorder %s745_s21, 3 }
   0x4   : > { %p214_p2 = pnand %p636_p0, %p213_p1 }
   0x5   : > { %v723_v0 = vld [vmem:[%s874_s1] sm:$0xff] (!%p214_p2)   ;;  %v747_v1 = vmov (!%p214_p2), 0.0   ;;  %v724_v2 = vld [vmem:[%s874_s1 + $0x8] sm:$0xff] (!%p214_p2)   ;;  %vm748_vm0 = vmmov (!%p214_p2), 0   ;;  %s637_s27 = sshll.u32 (!%p214_p2), %s632_s22, 1  ;;  %vm258_vm1 = vcmask (!%p214_p2), 261120   ;;  %v419_v42 = vlaneseq (!%p214_p2) }
   0x6   : > { %217 = sbr.rel (%p214_p2) target bundleno = 497 (0x1f1), region = 44  ;;  %676 = vmatprep.subr.bf16.mxu1 (!%p214_p2), %v747_v1  ;;  %692 = vmatprep.subr.bf16.mxu0 (!%p214_p2), %v747_v1  ;;  %p244_p3 = scmp.lt.s32.totalorder (!%p214_p2), %s637_s27, 3  ;;  %v725_v3 = vld [vmem:[%s875_s2] sm:$0xff] (!%p214_p2)   ;;  %v726_v13 = vld [vmem:[%s875_s2 + $0x8] sm:$0xff] (!%p214_p2)   ;;  %vm357_vm2 = vcmask (!%p214_p2), 1041409   ;;  %v729_v30 = vld [vmem:[%s877_s4 + $0x10] sm:$0xff] (!%p214_p2)  }
   0x7   : > { %677 = vmatpush3.bf16.msra.mxu1 (!%p214_p2), %v723_v0  ;;  %680 = vmatprep.mubr.msk.bf16.mxu1 (!%p214_p2), %vm748_vm0, %v747_v1  ;;  %v727_v28 = vld [vmem:[%s877_s4] sm:$0xff] (!%p214_p2)   ;;  %v728_v29 = vld [vmem:[%s877_s4 + $0x8] sm:$0xff] (!%p214_p2)   ;;  %v730_v31 = vld [vmem:[%s877_s4 + $0x18] sm:$0xff] (!%p214_p2)   ;;  %v749_v40 = vmov (!%p214_p2), 1966171168   ;;  %v420_v44 = vshrl.u32 (!%p214_p2), %v419_v42, 7 }
   0x8   : > { %678 = vmatprep.subr.bf16.mxu1 (!%p214_p2), %v747_v1  ;;  %708 = vmatprep.mubr.msk.bf16.mxu0 (!%p214_p2), %vm748_vm0, %v747_v1  ;;  %v731_v32 = vld [vmem:[%s877_s4 + $0x20] sm:$0xff] (!%p214_p2)   ;;  %v732_v33 = vld [vmem:[%s877_s4 + $0x28] sm:$0xff] (!%p214_p2)   ;;  %v733_v34 = vld [vmem:[%s877_s4 + $0x30] sm:$0xff] (!%p214_p2)   ;;  %v417_v41 = vunpack.c.l.s4 (!%p214_p2), %v749_v40  ;;  %vm573_vm3 = vcmask (!%p214_p2), 97280  }
   0x9   : > { %693 = vmatpush3.bf16.msra.mxu0 (!%p214_p2), %v727_v28  ;;  %v734_v35 = vld [vmem:[%s877_s4 + $0x38] sm:$0xff] (!%p214_p2)   ;;  %v645_v45 = vld [vmem:[%s876_s3] ss:$0 sm:$0xff] (!%p214_p2)  ;;  %v440_v52 = vsub.s32 (!%p214_p2), 0, %v420_v44 }
   0xa   : > { %694 = vmatprep.subr.bf16.mxu0 (!%p214_p2), %v747_v1  ;;  %v418_v43 = vunpack.c.0.s8 (!%p214_p2), %v417_v41 }
   0xb   : > { %679 = vmatpush3.bf16.msra.mxu1 (!%p214_p2), %v724_v2 }
   0xc   : > { %684 = vmatprep.subr.bf16.mxu1 (!%p214_p2), %v747_v1  ;;  %v421_v46 = vsub.s32 (!%p214_p2), %v418_v43, %v420_v44 }
   0xd   : > { %s881_s27 = smov (!%p244_p3, %s637_s27), 3  ;;  %695 = vmatpush3.bf16.msra.mxu0 %v728_v29 }
   0xe   : > { %s638_s28 = sshll.u32 %s881_s27, 3  ;;  %696 = vmatprep.subr.bf16.mxu0 %v747_v1 }
   0xf   : > { %s247_s9 = scalar_lea.vmem %s873_s0, %s638_s28  ;;  %s253_s13 = scalar_lea.vmem %s879_s6, %s638_s28 }
  0x10   : > { %v256_v4 = vld [vmem:[%s247_s9] sm:$0xff]  ;;  %v257_v5 = vld [vmem:[%s247_s9 + $0x8] sm:$0xff] }
  0x11   : > { %v259_v6 = vsel %vm258_vm1, %v256_v4, -inf  ;;  %v266_v7 = vsel %vm258_vm1, %v257_v5, -inf  ;;  %v660_v8 = vpack.c.bf16 %v257_v5, %v256_v4  ;;  %697 = vmatpush3.bf16.msra.mxu0 %v729_v30 }
  0x12   : > { %v260_v9 = vrot.slane %v259_v6, 4  ;;  %v267_v10 = vrot.slane %v266_v7, 4  ;;  %698 = vmatprep.subr.bf16.mxu0 %v747_v1 }
  0x13   : > { %681 = vmatmul.mubr.msk.bf16.vlgmr.msra.gmra.mrb[0].mxu1 %vm258_vm1, %v660_v8  ;;  %v649_v8 = vld [vmem:[%s878_s5] ss:$0 sm:$0xff] }
  0x14   : > { %v261_v11 = vmax.f32 %v259_v6, %v260_v9  ;;  %v268_v12 = vmax.f32 %v266_v7, %v267_v10  ;;  %685 = vmatpush3.bf16.msra.mxu1 %v725_v3  ;;  %688 = vmatprep.mubr.msk.bf16.mxu1 %vm748_vm0, %v747_v1 }
  0x15   : > { %686 = vmatprep.subr.bf16.mxu1 %v747_v1  ;;  %699 = vmatpush3.bf16.msra.mxu0 %v730_v31 }
  0x16   : > { %v262_v14 = vrot.slane %v261_v11, 2  ;;  %v269_v15 = vrot.slane %v268_v12, 2  ;;  %700 = vmatprep.subr.bf16.mxu0 %v747_v1 }
  0x18   : > { %v263_v16 = vmax.f32 %v261_v11, %v262_v14  ;;  %v270_v17 = vmax.f32 %v268_v12, %v269_v15  ;;  %687 = vmatpush3.bf16.msra.mxu1 %v726_v13 }
  0x19   : > { %701 = vmatpush3.bf16.msra.mxu0 %v731_v32 }
  0x1a   : > { %v264_v18 = vrot.slane %v263_v16, 1  ;;  %v271_v19 = vrot.slane %v270_v17, 1  ;;  %702 = vmatprep.subr.bf16.mxu0 %v747_v1 }
  0x1c   : > { %v265_v20 = vmax.f32 %v263_v16, %v264_v18  ;;  %v272_v21 = vmax.f32 %v270_v17, %v271_v19 }
  0x1d   : > { %703 = vmatpush3.bf16.msra.mxu0 %v732_v33 }
  0x1e   : > { %v275_v22 = vpack.c.bf16 %v265_v20, %v265_v20  ;;  %v276_v23 = vpack.c.bf16 %v272_v21, %v272_v21  ;;  %704 = vmatprep.subr.bf16.mxu0 %v747_v1 }
  0x20   : > { %v355_v24 = vunpack.c.l.b16 %v275_v22  ;;  %v356_v25 = vunpack.c.l.b16 %v276_v23 }
  0x21   : > { %705 = vmatpush3.bf16.msra.mxu0 %v733_v34 }
  0x22   : > { %v358_v26 = vsel %vm357_vm2, %v356_v25, %v355_v24  ;;  %706 = vmatprep.subr.bf16.mxu0 %v747_v1 }
  0x23   : > { %v359_v27 = vpack.c.b16 %v358_v26, %v358_v26 }
  0x25   : > { %689 = vmatmul.mubr.msk.bf16.vlgmr.msra.gmra.mrb[4].mxu1 %vm258_vm1, %v359_v27  ;;  %707 = vmatpush3.bf16.msra.mxu0 %v734_v35 }
  0xe6   : > { %v335_v36 = vpop.f32.mrb[0].mxu1 }
  0xe7   : > { %v682_v37 = vpop.f32.mrb[1].mxu1 }
  0xe8   : > { %v338_v38 = vpop.f32.mrb[2].mxu1 }
  0xe9   : > { %v683_v39 = vpop.f32.mrb[3].mxu1 }
  0xf8   : > { %v409_v47 = vpop.f32.mrb[4].mxu1 }
  0xf9   : > { %v410_v48 = vadd.f32 %v645_v45, %v409_v47  ;;  %v690_v49 = vpop.f32.mrb[5].mxu1 }
  0xfa   : > { %v412_v50 = vpop.f32.mrb[6].mxu1 }
  0xfb   : > { %v422_v51 = vrot.slane %v410_v48, %v421_v46  ;;  %v691_v53 = vpop.f32.mrb[7].mxu1 }
  0xfd   : > { %v423_v54 = vcombine.high %v422_v51, %v422_v51  ;;  %v430_v55 = vrot.slane %v422_v51, %v421_v46 }
  0xff   : > { %v437_v56 = vrot.slane %v423_v54, %v421_v46  ;;  %v441_v57 = vrot.slane %v430_v55, %v440_v52 }
 0x101   : > { %v445_v58 = vrot.slane %v437_v56, %v440_v52  ;;  %v448_v59 = vadd.f32 %v441_v57, %v335_v36 }
 0x103   : > { %v452_v60 = vmul.f32 0.70710677, %v448_v59  ;;  %v449_v61 = vadd.f32 %v445_v58, %v338_v38  ;;  %v450_v2 = vmul.f32 0.5, %v448_v59 }
 0x105   : > { %v453_v62 = vmul.f32 0.70710677, %v449_v61  ;;  %735 = verf.f32 %v452_v60  ;;  %v451_v3 = vmul.f32 0.5, %v449_v61 }
 0x107   : > { %737 = verf.f32 %v453_v62 }
 0x10f   : > { %v736_v63 = vpop.eup %735 }
 0x110   : > { %v456_v0 = vadd.f32 1.0, %v736_v63 }
 0x111   : > { %v738_v1 = vpop.eup %737 }
 0x112   : > { %v457_v4 = vadd.f32 1.0, %v738_v1  ;;  %v458_v5 = vmul.f32 %v456_v0, %v450_v2 }
 0x114   : > { %v459_v6 = vmul.f32 %v457_v4, %v451_v3 }
 0x116   : > { %v460_v7 = vpack.c.bf16 %v459_v6, %v458_v5 }
 0x118   : > { %709 = vmatmul.mubr.bf16.vlgmr.msra.gmra.mrb[0].mxu0 %v460_v7 }
 0x1eb   : > { %v566_v9 = vpop.f32.mrb[0].mxu0 }
 0x1ec   : > { %v567_v10 = vadd.f32 %v649_v8, %v566_v9  ;;  %v710_v11 = vpop.f32.mrb[1].mxu0 }
 0x1ed   : > { %v569_v12 = vpop.f32.mrb[2].mxu0 }
 0x1ee   : > { %574 = vst.msk [vmem:[%s253_s13] sm:$0xff] %vm573_vm3, %v567_v10  ;;  %v570_v13 = vadd.f32 %v649_v8, %v569_v12  ;;  %v711_v14 = vpop.f32.mrb[3].mxu0 }
 0x1f0   : > { %575 = vst.msk [vmem:[%s253_s13 + $0x8] sm:$0xff] %vm573_vm3, %v570_v13 }
 0x1f1 PF: > { %s16_s21 = sadd.s32 1, %s745_s21  }
 0x1f2   : > { %p13_p4 = scmp.ge.s32.totalorder %s16_s21, 4  }
 0x1f4   :  { %15 = sbr.rel (!%p13_p4) target bundleno = 1 (0x1), region = 74 }

</bundles_post_ra>
